<compile_context>
chip_gen: v5e
topology: v5e:2x2
jax: 0.10.0
libtpu: 0.0.40
codegen_flags: <defaults>
</compile_context>

<pallas_src>
import numpy as np

import jax
import jax.numpy as jnp
from jax.experimental import pallas as pl
from jax.experimental.pallas import tpu as pltpu

_LANE = 128
_MAX_TILE_ROWS = 512      # 512*128 f32 = 256 KiB in-block; out-block = (1+2L)x that
_RESEED_EVERY = 4         # exact sin/cos re-seed period for the double-angle path


def _round_up(a, b):
    return (a + b - 1) // b * b


def _make_embedding_kernel(freq_bands, use_doubling):
    """freq_bands: static tuple of python floats (baked into the kernel)."""
    freq_bands = tuple(float(f) for f in freq_bands)

    def kernel(x_ref, o_ref):
        # x_ref: (TILE_ROWS, 128) f32 ; o_ref: (P, TILE_ROWS, 128) f32
        x = x_ref[...]
        o_ref[0] = x                                  # include_input = True
        s = None
        c = None
        for k, f in enumerate(freq_bands):
            if (not use_doubling) or (k % _RESEED_EVERY == 0):
                xf = x * f                            # f is a power of two -> exact
                s = jnp.sin(xf)                       # EUP
                c = jnp.cos(xf)                       # EUP
            else:
                # freq doubles each step: sin(2t) = 2 s c, cos(2t) = 1 - 2 s^2 (VPU)
                s, c = 2.0 * s * c, 1.0 - 2.0 * s * s
            o_ref[2 * k + 1] = s
            o_ref[2 * k + 2] = c

    return kernel


def nerf_positional_embedding(x, multires, log_sampling=True, _max_tile_rows=_MAX_TILE_ROWS):
    """Pallas implementation of Nerf_positional_embedding.forward.

    x: (1, N, D) or (N, D) float32 array.
    returns: (N, D * (1 + 2 * multires)) array, feature order
             [x, sin(f0 x), cos(f0 x), sin(f1 x), cos(f1 x), ...].
    """
    if x.ndim == 3:
        x = jnp.squeeze(x, axis=0)
    assert x.ndim == 2, f"Expected 2D input (got {x.ndim}D input)"
    N, D = x.shape

    n_freqs = int(multires)
    max_freq = float(multires - 1)
    if log_sampling:
        freq_bands = 2.0 ** np.linspace(0.0, max_freq, num=n_freqs)
    else:
        freq_bands = np.linspace(2.0 ** 0.0, 2.0 ** max_freq, num=n_freqs)
    freq_bands = tuple(float(f) for f in freq_bands)

    # Double-angle recurrence is only exact when consecutive freqs differ by 2x.
    use_doubling = log_sampling and all(
        freq_bands[k + 1] == 2.0 * freq_bands[k] for k in range(n_freqs - 1))

    P = 1 + 2 * n_freqs
    total = N * D

    # Lane-dense layout: flatten the element stream into a (rows, 128) slab.
    rows = max(1, pl.cdiv(total, _LANE))
    tile_rows = min(int(_max_tile_rows), _round_up(rows, 8))
    padded_rows = _round_up(rows, tile_rows)
    padded_total = padded_rows * _LANE

    x_flat = jnp.ravel(x)
    x_flat = jnp.pad(x_flat, (0, padded_total - total))
    x2d = x_flat.reshape(padded_rows, _LANE)

    grid = (padded_rows // tile_rows,)
    kernel = _make_embedding_kernel(freq_bands, use_doubling)

    out = pl.pallas_call(
        kernel,
        out_shape=jax.ShapeDtypeStruct((P, padded_rows, _LANE), x.dtype),
        grid=grid,
        in_specs=[pl.BlockSpec((tile_rows, _LANE), lambda i: (i, 0))],
        out_specs=pl.BlockSpec((P, tile_rows, _LANE), lambda i: (0, i, 0)),
        compiler_params=pltpu.CompilerParams(
            dimension_semantics=("parallel",)),
    )(x2d)

    # Layout plumbing back to the PyTorch concat order (wrapper-side, cheap).
    out = out.reshape(P, padded_total)[:, :total].reshape(P, N, D)
    out = jnp.transpose(out, (1, 0, 2)).reshape(N, P * D)
    return out


def _reference(x, multires, log_sampling=True):
    """Pure-JAX reference mirroring the PyTorch forward."""
    if x.ndim == 3:
        x = jnp.squeeze(x, axis=0)
    n_freqs = int(multires)
    max_freq = float(multires - 1)
    if log_sampling:
        freq_bands = 2.0 ** np.linspace(0.0, max_freq, num=n_freqs)
    else:
        freq_bands = np.linspace(2.0 ** 0.0, 2.0 ** max_freq, num=n_freqs)
    outs = [x]
    for f in freq_bands:
        outs.append(jnp.sin(x * float(f)))
        outs.append(jnp.cos(x * float(f)))
    return jnp.concatenate(outs, axis=1)


if __name__ == "__main__":
    key = jax.random.PRNGKey(0)

    # Case 1: standard NeRF encoding, small input, single grid step.
    multires = 10
    N, D = 16, 3
    x = jax.random.normal(key, (1, N, D), dtype=jnp.float32)
    out = jax.block_until_ready(nerf_positional_embedding(x, multires, log_sampling=True))
    ref = jax.block_until_ready(_reference(x, multires, log_sampling=True))
    assert out.shape == (N, D * (1 + 2 * multires)), out.shape
    np.testing.assert_allclose(np.asarray(out), np.asarray(ref), rtol=1e-4, atol=1e-4)

    # Case 2: exercise the N-tiled grid (>1 step) + padding/slicing with a tiny tile.
    N2 = 600
    x2 = jax.random.normal(jax.random.PRNGKey(1), (1, N2, D), dtype=jnp.float32)
    out2 = jax.block_until_ready(
        nerf_positional_embedding(x2, multires, log_sampling=True, _max_tile_rows=8))
    ref2 = jax.block_until_ready(_reference(x2, multires, log_sampling=True))
    np.testing.assert_allclose(np.asarray(out2), np.asarray(ref2), rtol=1e-4, atol=1e-4)

    # Case 3: non-log sampling path (direct sin/cos, no recurrence).
    multires3 = 6
    x3 = jax.random.normal(jax.random.PRNGKey(2), (1, 40, D), dtype=jnp.float32)
    out3 = jax.block_until_ready(nerf_positional_embedding(x3, multires3, log_sampling=False))
    ref3 = jax.block_until_ready(_reference(x3, multires3, log_sampling=False))
    np.testing.assert_allclose(np.asarray(out3), np.asarray(ref3), rtol=1e-5, atol=1e-5)

    print("KERNEL_OK")
</pallas_src>

<mosaic_0001>
module attributes {stable_mosaic.version = 11 : i64} {
  func.func @kernel(%arg0: i32, %arg1: memref<8x128xf32, #tpu.memory_space<vmem>>, %arg2: memref<21x8x128xf32, #tpu.memory_space<vmem>>) attributes {dimension_semantics = [#tpu.dimension_semantics<parallel>], iteration_bounds = array<i64: 1>, scalar_prefetch = 0 : i64, scratch_operands = 0 : i64, tpu.core_type = #tpu.core_type<tc>, window_params = [{transform_indices = @transform_0, window_bounds = array<i64: 8, 128>}, {transform_indices = @transform_1, window_bounds = array<i64: 21, 8, 128>}]} {
    %c0 = arith.constant 0 : index
    %c0_0 = arith.constant 0 : index
    %0 = vector.load %arg1[%c0, %c0_0] : memref<8x128xf32, #tpu.memory_space<vmem>>, vector<8x128xf32>
    %c0_1 = arith.constant 0 : index
    %c0_2 = arith.constant 0 : index
    %c0_3 = arith.constant 0 : index
    %1 = vector.load %arg2[%c0_1, %c0_2, %c0_3] : memref<21x8x128xf32, #tpu.memory_space<vmem>>, vector<1x8x128xf32>
    %2 = vector.shape_cast %1 : vector<1x8x128xf32> to vector<8x128xf32>
    %3 = vector.shape_cast %0 : vector<8x128xf32> to vector<1x8x128xf32>
    tpu.vector_store %arg2[%c0_1, %c0_2, %c0_3], %3 {strides = array<i32>} : memref<21x8x128xf32, #tpu.memory_space<vmem>>, vector<1x8x128xf32>,
    %cst = arith.constant 1.000000e+00 : f32
    %4 = vector.broadcast %cst : f32 to vector<8x128xf32>
    %5 = arith.mulf %0, %4 : vector<8x128xf32>
    %6 = math.sin %5 : vector<8x128xf32>
    %7 = math.cos %5 : vector<8x128xf32>
    %c1 = arith.constant 1 : index
    %c0_4 = arith.constant 0 : index
    %c0_5 = arith.constant 0 : index
    %8 = vector.load %arg2[%c1, %c0_4, %c0_5] : memref<21x8x128xf32, #tpu.memory_space<vmem>>, vector<1x8x128xf32>
    %9 = vector.shape_cast %8 : vector<1x8x128xf32> to vector<8x128xf32>
    %10 = vector.shape_cast %6 : vector<8x128xf32> to vector<1x8x128xf32>
    tpu.vector_store %arg2[%c1, %c0_4, %c0_5], %10 {strides = array<i32>} : memref<21x8x128xf32, #tpu.memory_space<vmem>>, vector<1x8x128xf32>,
    %c2 = arith.constant 2 : index
    %c0_6 = arith.constant 0 : index
    %c0_7 = arith.constant 0 : index
    %11 = vector.load %arg2[%c2, %c0_6, %c0_7] : memref<21x8x128xf32, #tpu.memory_space<vmem>>, vector<1x8x128xf32>
    %12 = vector.shape_cast %11 : vector<1x8x128xf32> to vector<8x128xf32>
    %13 = vector.shape_cast %7 : vector<8x128xf32> to vector<1x8x128xf32>
    tpu.vector_store %arg2[%c2, %c0_6, %c0_7], %13 {strides = array<i32>} : memref<21x8x128xf32, #tpu.memory_space<vmem>>, vector<1x8x128xf32>,
    %cst_8 = arith.constant 2.000000e+00 : f32
    %14 = vector.broadcast %cst_8 : f32 to vector<8x128xf32>
    %15 = arith.mulf %14, %6 : vector<8x128xf32>
    %16 = arith.mulf %15, %7 : vector<8x128xf32>
    %cst_9 = arith.constant 2.000000e+00 : f32
    %17 = vector.broadcast %cst_9 : f32 to vector<8x128xf32>
    %18 = arith.mulf %17, %6 : vector<8x128xf32>
    %19 = arith.mulf %18, %6 : vector<8x128xf32>
    %cst_10 = arith.constant 1.000000e+00 : f32
    %20 = vector.broadcast %cst_10 : f32 to vector<8x128xf32>
    %21 = arith.subf %20, %19 : vector<8x128xf32>
    %c3 = arith.constant 3 : index
    %c0_11 = arith.constant 0 : index
    %c0_12 = arith.constant 0 : index
    %22 = vector.load %arg2[%c3, %c0_11, %c0_12] : memref<21x8x128xf32, #tpu.memory_space<vmem>>, vector<1x8x128xf32>
    %23 = vector.shape_cast %22 : vector<1x8x128xf32> to vector<8x128xf32>
    %24 = vector.shape_cast %16 : vector<8x128xf32> to vector<1x8x128xf32>
    tpu.vector_store %arg2[%c3, %c0_11, %c0_12], %24 {strides = array<i32>} : memref<21x8x128xf32, #tpu.memory_space<vmem>>, vector<1x8x128xf32>,
    %c4 = arith.constant 4 : index
    %c0_13 = arith.constant 0 : index
    %c0_14 = arith.constant 0 : index
    %25 = vector.load %arg2[%c4, %c0_13, %c0_14] : memref<21x8x128xf32, #tpu.memory_space<vmem>>, vector<1x8x128xf32>
    %26 = vector.shape_cast %25 : vector<1x8x128xf32> to vector<8x128xf32>
    %27 = vector.shape_cast %21 : vector<8x128xf32> to vector<1x8x128xf32>
    tpu.vector_store %arg2[%c4, %c0_13, %c0_14], %27 {strides = array<i32>} : memref<21x8x128xf32, #tpu.memory_space<vmem>>, vector<1x8x128xf32>,
    %cst_15 = arith.constant 2.000000e+00 : f32
    %28 = vector.broadcast %cst_15 : f32 to vector<8x128xf32>
    %29 = arith.mulf %28, %16 : vector<8x128xf32>
    %30 = arith.mulf %29, %21 : vector<8x128xf32>
    %cst_16 = arith.constant 2.000000e+00 : f32
    %31 = vector.broadcast %cst_16 : f32 to vector<8x128xf32>
    %32 = arith.mulf %31, %16 : vector<8x128xf32>
    %33 = arith.mulf %32, %16 : vector<8x128xf32>
    %cst_17 = arith.constant 1.000000e+00 : f32
    %34 = vector.broadcast %cst_17 : f32 to vector<8x128xf32>
    %35 = arith.subf %34, %33 : vector<8x128xf32>
    %c5 = arith.constant 5 : index
    %c0_18 = arith.constant 0 : index
    %c0_19 = arith.constant 0 : index
    %36 = vector.load %arg2[%c5, %c0_18, %c0_19] : memref<21x8x128xf32, #tpu.memory_space<vmem>>, vector<1x8x128xf32>
    %37 = vector.shape_cast %36 : vector<1x8x128xf32> to vector<8x128xf32>
    %38 = vector.shape_cast %30 : vector<8x128xf32> to vector<1x8x128xf32>
    tpu.vector_store %arg2[%c5, %c0_18, %c0_19], %38 {strides = array<i32>} : memref<21x8x128xf32, #tpu.memory_space<vmem>>, vector<1x8x128xf32>,
    %c6 = arith.constant 6 : index
    %c0_20 = arith.constant 0 : index
    %c0_21 = arith.constant 0 : index
    %39 = vector.load %arg2[%c6, %c0_20, %c0_21] : memref<21x8x128xf32, #tpu.memory_space<vmem>>, vector<1x8x128xf32>
    %40 = vector.shape_cast %39 : vector<1x8x128xf32> to vector<8x128xf32>
    %41 = vector.shape_cast %35 : vector<8x128xf32> to vector<1x8x128xf32>
    tpu.vector_store %arg2[%c6, %c0_20, %c0_21], %41 {strides = array<i32>} : memref<21x8x128xf32, #tpu.memory_space<vmem>>, vector<1x8x128xf32>,
    %cst_22 = arith.constant 2.000000e+00 : f32
    %42 = vector.broadcast %cst_22 : f32 to vector<8x128xf32>
    %43 = arith.mulf %42, %30 : vector<8x128xf32>
    %44 = arith.mulf %43, %35 : vector<8x128xf32>
    %cst_23 = arith.constant 2.000000e+00 : f32
    %45 = vector.broadcast %cst_23 : f32 to vector<8x128xf32>
    %46 = arith.mulf %45, %30 : vector<8x128xf32>
    %47 = arith.mulf %46, %30 : vector<8x128xf32>
    %cst_24 = arith.constant 1.000000e+00 : f32
    %48 = vector.broadcast %cst_24 : f32 to vector<8x128xf32>
    %49 = arith.subf %48, %47 : vector<8x128xf32>
    %c7 = arith.constant 7 : index
    %c0_25 = arith.constant 0 : index
    %c0_26 = arith.constant 0 : index
    %50 = vector.load %arg2[%c7, %c0_25, %c0_26] : memref<21x8x128xf32, #tpu.memory_space<vmem>>, vector<1x8x128xf32>
    %51 = vector.shape_cast %50 : vector<1x8x128xf32> to vector<8x128xf32>
    %52 = vector.shape_cast %44 : vector<8x128xf32> to vector<1x8x128xf32>
    tpu.vector_store %arg2[%c7, %c0_25, %c0_26], %52 {strides = array<i32>} : memref<21x8x128xf32, #tpu.memory_space<vmem>>, vector<1x8x128xf32>,
    %c8 = arith.constant 8 : index
    %c0_27 = arith.constant 0 : index
    %c0_28 = arith.constant 0 : index
    %53 = vector.load %arg2[%c8, %c0_27, %c0_28] : memref<21x8x128xf32, #tpu.memory_space<vmem>>, vector<1x8x128xf32>
    %54 = vector.shape_cast %53 : vector<1x8x128xf32> to vector<8x128xf32>
    %55 = vector.shape_cast %49 : vector<8x128xf32> to vector<1x8x128xf32>
    tpu.vector_store %arg2[%c8, %c0_27, %c0_28], %55 {strides = array<i32>} : memref<21x8x128xf32, #tpu.memory_space<vmem>>, vector<1x8x128xf32>,
    %cst_29 = arith.constant 1.600000e+01 : f32
    %56 = vector.broadcast %cst_29 : f32 to vector<8x128xf32>
    %57 = arith.mulf %0, %56 : vector<8x128xf32>
    %58 = math.sin %57 : vector<8x128xf32>
    %59 = math.cos %57 : vector<8x128xf32>
    %c9 = arith.constant 9 : index
    %c0_30 = arith.constant 0 : index
    %c0_31 = arith.constant 0 : index
    %60 = vector.load %arg2[%c9, %c0_30, %c0_31] : memref<21x8x128xf32, #tpu.memory_space<vmem>>, vector<1x8x128xf32>
    %61 = vector.shape_cast %60 : vector<1x8x128xf32> to vector<8x128xf32>
    %62 = vector.shape_cast %58 : vector<8x128xf32> to vector<1x8x128xf32>
    tpu.vector_store %arg2[%c9, %c0_30, %c0_31], %62 {strides = array<i32>} : memref<21x8x128xf32, #tpu.memory_space<vmem>>, vector<1x8x128xf32>,
    %c10 = arith.constant 10 : index
    %c0_32 = arith.constant 0 : index
    %c0_33 = arith.constant 0 : index
    %63 = vector.load %arg2[%c10, %c0_32, %c0_33] : memref<21x8x128xf32, #tpu.memory_space<vmem>>, vector<1x8x128xf32>
    %64 = vector.shape_cast %63 : vector<1x8x128xf32> to vector<8x128xf32>
    %65 = vector.shape_cast %59 : vector<8x128xf32> to vector<1x8x128xf32>
    tpu.vector_store %arg2[%c10, %c0_32, %c0_33], %65 {strides = array<i32>} : memref<21x8x128xf32, #tpu.memory_space<vmem>>, vector<1x8x128xf32>,
    %cst_34 = arith.constant 2.000000e+00 : f32
    %66 = vector.broadcast %cst_34 : f32 to vector<8x128xf32>
    %67 = arith.mulf %66, %58 : vector<8x128xf32>
    %68 = arith.mulf %67, %59 : vector<8x128xf32>
    %cst_35 = arith.constant 2.000000e+00 : f32
    %69 = vector.broadcast %cst_35 : f32 to vector<8x128xf32>
    %70 = arith.mulf %69, %58 : vector<8x128xf32>
    %71 = arith.mulf %70, %58 : vector<8x128xf32>
    %cst_36 = arith.constant 1.000000e+00 : f32
    %72 = vector.broadcast %cst_36 : f32 to vector<8x128xf32>
    %73 = arith.subf %72, %71 : vector<8x128xf32>
    %c11 = arith.constant 11 : index
    %c0_37 = arith.constant 0 : index
    %c0_38 = arith.constant 0 : index
    %74 = vector.load %arg2[%c11, %c0_37, %c0_38] : memref<21x8x128xf32, #tpu.memory_space<vmem>>, vector<1x8x128xf32>
    %75 = vector.shape_cast %74 : vector<1x8x128xf32> to vector<8x128xf32>
    %76 = vector.shape_cast %68 : vector<8x128xf32> to vector<1x8x128xf32>
    tpu.vector_store %arg2[%c11, %c0_37, %c0_38], %76 {strides = array<i32>} : memref<21x8x128xf32, #tpu.memory_space<vmem>>, vector<1x8x128xf32>,
    %c12 = arith.constant 12 : index
    %c0_39 = arith.constant 0 : index
    %c0_40 = arith.constant 0 : index
    %77 = vector.load %arg2[%c12, %c0_39, %c0_40] : memref<21x8x128xf32, #tpu.memory_space<vmem>>, vector<1x8x128xf32>
    %78 = vector.shape_cast %77 : vector<1x8x128xf32> to vector<8x128xf32>
    %79 = vector.shape_cast %73 : vector<8x128xf32> to vector<1x8x128xf32>
    tpu.vector_store %arg2[%c12, %c0_39, %c0_40], %79 {strides = array<i32>} : memref<21x8x128xf32, #tpu.memory_space<vmem>>, vector<1x8x128xf32>,
    %cst_41 = arith.constant 2.000000e+00 : f32
    %80 = vector.broadcast %cst_41 : f32 to vector<8x128xf32>
    %81 = arith.mulf %80, %68 : vector<8x128xf32>
    %82 = arith.mulf %81, %73 : vector<8x128xf32>
    %cst_42 = arith.constant 2.000000e+00 : f32
    %83 = vector.broadcast %cst_42 : f32 to vector<8x128xf32>
    %84 = arith.mulf %83, %68 : vector<8x128xf32>
    %85 = arith.mulf %84, %68 : vector<8x128xf32>
    %cst_43 = arith.constant 1.000000e+00 : f32
    %86 = vector.broadcast %cst_43 : f32 to vector<8x128xf32>
    %87 = arith.subf %86, %85 : vector<8x128xf32>
    %c13 = arith.constant 13 : index
    %c0_44 = arith.constant 0 : index
    %c0_45 = arith.constant 0 : index
    %88 = vector.load %arg2[%c13, %c0_44, %c0_45] : memref<21x8x128xf32, #tpu.memory_space<vmem>>, vector<1x8x128xf32>
    %89 = vector.shape_cast %88 : vector<1x8x128xf32> to vector<8x128xf32>
    %90 = vector.shape_cast %82 : vector<8x128xf32> to vector<1x8x128xf32>
    tpu.vector_store %arg2[%c13, %c0_44, %c0_45], %90 {strides = array<i32>} : memref<21x8x128xf32, #tpu.memory_space<vmem>>, vector<1x8x128xf32>,
    %c14 = arith.constant 14 : index
    %c0_46 = arith.constant 0 : index
    %c0_47 = arith.constant 0 : index
    %91 = vector.load %arg2[%c14, %c0_46, %c0_47] : memref<21x8x128xf32, #tpu.memory_space<vmem>>, vector<1x8x128xf32>
    %92 = vector.shape_cast %91 : vector<1x8x128xf32> to vector<8x128xf32>
    %93 = vector.shape_cast %87 : vector<8x128xf32> to vector<1x8x128xf32>
    tpu.vector_store %arg2[%c14, %c0_46, %c0_47], %93 {strides = array<i32>} : memref<21x8x128xf32, #tpu.memory_space<vmem>>, vector<1x8x128xf32>,
    %cst_48 = arith.constant 2.000000e+00 : f32
    %94 = vector.broadcast %cst_48 : f32 to vector<8x128xf32>
    %95 = arith.mulf %94, %82 : vector<8x128xf32>
    %96 = arith.mulf %95, %87 : vector<8x128xf32>
    %cst_49 = arith.constant 2.000000e+00 : f32
    %97 = vector.broadcast %cst_49 : f32 to vector<8x128xf32>
    %98 = arith.mulf %97, %82 : vector<8x128xf32>
    %99 = arith.mulf %98, %82 : vector<8x128xf32>
    %cst_50 = arith.constant 1.000000e+00 : f32
    %100 = vector.broadcast %cst_50 : f32 to vector<8x128xf32>
    %101 = arith.subf %100, %99 : vector<8x128xf32>
    %c15 = arith.constant 15 : index
    %c0_51 = arith.constant 0 : index
    %c0_52 = arith.constant 0 : index
    %102 = vector.load %arg2[%c15, %c0_51, %c0_52] : memref<21x8x128xf32, #tpu.memory_space<vmem>>, vector<1x8x128xf32>
    %103 = vector.shape_cast %102 : vector<1x8x128xf32> to vector<8x128xf32>
    %104 = vector.shape_cast %96 : vector<8x128xf32> to vector<1x8x128xf32>
    tpu.vector_store %arg2[%c15, %c0_51, %c0_52], %104 {strides = array<i32>} : memref<21x8x128xf32, #tpu.memory_space<vmem>>, vector<1x8x128xf32>,
    %c16 = arith.constant 16 : index
    %c0_53 = arith.constant 0 : index
    %c0_54 = arith.constant 0 : index
    %105 = vector.load %arg2[%c16, %c0_53, %c0_54] : memref<21x8x128xf32, #tpu.memory_space<vmem>>, vector<1x8x128xf32>
    %106 = vector.shape_cast %105 : vector<1x8x128xf32> to vector<8x128xf32>
    %107 = vector.shape_cast %101 : vector<8x128xf32> to vector<1x8x128xf32>
    tpu.vector_store %arg2[%c16, %c0_53, %c0_54], %107 {strides = array<i32>} : memref<21x8x128xf32, #tpu.memory_space<vmem>>, vector<1x8x128xf32>,
    %cst_55 = arith.constant 2.560000e+02 : f32
    %108 = vector.broadcast %cst_55 : f32 to vector<8x128xf32>
    %109 = arith.mulf %0, %108 : vector<8x128xf32>
    %110 = math.sin %109 : vector<8x128xf32>
    %111 = math.cos %109 : vector<8x128xf32>
    %c17 = arith.constant 17 : index
    %c0_56 = arith.constant 0 : index
    %c0_57 = arith.constant 0 : index
    %112 = vector.load %arg2[%c17, %c0_56, %c0_57] : memref<21x8x128xf32, #tpu.memory_space<vmem>>, vector<1x8x128xf32>
    %113 = vector.shape_cast %112 : vector<1x8x128xf32> to vector<8x128xf32>
    %114 = vector.shape_cast %110 : vector<8x128xf32> to vector<1x8x128xf32>
    tpu.vector_store %arg2[%c17, %c0_56, %c0_57], %114 {strides = array<i32>} : memref<21x8x128xf32, #tpu.memory_space<vmem>>, vector<1x8x128xf32>,
    %c18 = arith.constant 18 : index
    %c0_58 = arith.constant 0 : index
    %c0_59 = arith.constant 0 : index
    %115 = vector.load %arg2[%c18, %c0_58, %c0_59] : memref<21x8x128xf32, #tpu.memory_space<vmem>>, vector<1x8x128xf32>
    %116 = vector.shape_cast %115 : vector<1x8x128xf32> to vector<8x128xf32>
    %117 = vector.shape_cast %111 : vector<8x128xf32> to vector<1x8x128xf32>
    tpu.vector_store %arg2[%c18, %c0_58, %c0_59], %117 {strides = array<i32>} : memref<21x8x128xf32, #tpu.memory_space<vmem>>, vector<1x8x128xf32>,
    %cst_60 = arith.constant 2.000000e+00 : f32
    %118 = vector.broadcast %cst_60 : f32 to vector<8x128xf32>
    %119 = arith.mulf %118, %110 : vector<8x128xf32>
    %120 = arith.mulf %119, %111 : vector<8x128xf32>
    %cst_61 = arith.constant 2.000000e+00 : f32
    %121 = vector.broadcast %cst_61 : f32 to vector<8x128xf32>
    %122 = arith.mulf %121, %110 : vector<8x128xf32>
    %123 = arith.mulf %122, %110 : vector<8x128xf32>
    %cst_62 = arith.constant 1.000000e+00 : f32
    %124 = vector.broadcast %cst_62 : f32 to vector<8x128xf32>
    %125 = arith.subf %124, %123 : vector<8x128xf32>
    %c19 = arith.constant 19 : index
    %c0_63 = arith.constant 0 : index
    %c0_64 = arith.constant 0 : index
    %126 = vector.load %arg2[%c19, %c0_63, %c0_64] : memref<21x8x128xf32, #tpu.memory_space<vmem>>, vector<1x8x128xf32>
    %127 = vector.shape_cast %126 : vector<1x8x128xf32> to vector<8x128xf32>
    %128 = vector.shape_cast %120 : vector<8x128xf32> to vector<1x8x128xf32>
    tpu.vector_store %arg2[%c19, %c0_63, %c0_64], %128 {strides = array<i32>} : memref<21x8x128xf32, #tpu.memory_space<vmem>>, vector<1x8x128xf32>,
    %c20 = arith.constant 20 : index
    %c0_65 = arith.constant 0 : index
    %c0_66 = arith.constant 0 : index
    %129 = vector.load %arg2[%c20, %c0_65, %c0_66] : memref<21x8x128xf32, #tpu.memory_space<vmem>>, vector<1x8x128xf32>
    %130 = vector.shape_cast %129 : vector<1x8x128xf32> to vector<8x128xf32>
    %131 = vector.shape_cast %125 : vector<8x128xf32> to vector<1x8x128xf32>
    tpu.vector_store %arg2[%c20, %c0_65, %c0_66], %131 {strides = array<i32>} : memref<21x8x128xf32, #tpu.memory_space<vmem>>, vector<1x8x128xf32>,
    return
  }
  func.func @transform_0(%arg0: i32) -> (i32, i32) {
    %c0_i32 = arith.constant 0 : i32
    %c0_i32_0 = arith.constant 0 : i32
    return %arg0, %c0_i32 : i32, i32
  }
  func.func @transform_1(%arg0: i32) -> (i32, i32, i32) {
    %c0_i32 = arith.constant 0 : i32
    %c0_i32_0 = arith.constant 0 : i32
    %c0_i32_1 = arith.constant 0 : i32
    return %c0_i32, %arg0, %c0_i32_0 : i32, i32, i32
  }
}

</mosaic_0001>

<bundles_post_ra>
// kernel: tpu_custom_call.1
= control target key start
LH: loop header
LB: loop body
LE: loop exit
PB: predicated region body
PF: predicated region fallthrough
CT: control target
= control target key end

     0   :  { %6 = vsyncpa [#allocation3], 0  ;;  %s1430_s0 = inlined_call_operand.hbm [shape: f32[8,128], index: 0, kind: input, shape index: {}]   ;;  %s1431_s1 = inlined_call_operand.hbm [shape: f32[21,8,128], index: 1, kind: output, shape index: {}]  }
   0x1   :  { %7 = vsyncpa [#allocation4], 0  ;;  %s13_s8 = sshll.u32 %s1430_s0, 4  ;;  %s1122_s9 = smov [#allocation2]   ;;  %s14_s8 = int_to_ptr.hbm [resolvable:$true] %s13_s8 }
   0x2   :  { %s15_s10 = sshll.u32 %s1122_s9, 4  ;;  %s16_s10 = int_to_ptr.vmem [resolvable:$true] %s15_s10 }
   0x3   :  { %18 = dma.hbm_to_vmem [thread:$0]  %s14_s8, 128, %s16_s10, [#allocation3]  }
   0x4   :  { %1118 = dma.done.wait [#allocation3], 128  }
   0x5   :  { %1119 = vsyncadd [#allocation3], 4294967168  ;;  %v1146_v0 = vld [vmem:[#allocation2] sm:$0xff]  ;;  %v1123_v24 = vmov 683565275   ;;  %s1130_s0 = smov [#allocation5]  }
   0x6   :  { %24 = vst [vmem:[#allocation5] sm:$0xff] %v1146_v0  ;;  %v28_v1 = vand.u32 2139095040, %v1146_v0  ;;  %v25_v2 = vand.u32 2147483647, %v1146_v0  ;;  %v1152_v3 = vmul.f32 16.0, %v1146_v0  ;;  %v1159_v8 = vmul.f32 256.0, %v1146_v0 }
   0x7   :  { %v1124_v26 = vmov 2475754826   ;;  %v1125_v28 = vmov 2131351028   ;;  %v1126_v30 = vmov 2102212464  }
   0x8   :  { %v29_v4 = vshrl.u32 %v28_v1, 23  ;;  %v32_v5 = vand.u32 8388607, %v25_v2  ;;  %v366_v6 = vand.u32 2139095040, %v1152_v3  ;;  %v363_v7 = vand.u32 2147483647, %v1152_v3 }
   0x9   :  { %v704_v15 = vand.u32 2139095040, %v1159_v8  ;;  %v1127_v32 = vmov 920167782   ;;  %v1128_v41 = vmov 1326507024   ;;  %s1026_s11 = sshll.u32 %s1130_s0, 4  ;;  %s1027_s11 = int_to_ptr.vmem [resolvable:$true] %s1026_s11 }
   0xa   :  { %v1041_v9 = vadd.s32 4294967169, %v29_v4  ;;  %v367_v10 = vshrl.u32 %v366_v6, 23  ;;  %v33_v11 = vor.u32 8388608, %v32_v5  ;;  %v370_v14 = vand.u32 8388607, %v363_v7  ;;  %s1028_s14 = sshll.u32 %s1431_s1, 4  ;;  %s1029_s14 = int_to_ptr.hbm [resolvable:$true] %s1028_s14 }
   0xb   :  { %v1166_v22 = vshrl.u32 %v704_v15, 23  ;;  %s1131_s15 = smov 128   ;;  %s1132_s16 = smov 8  }
   0xc   :  { %v35_v12 = vadd.s32 1, %v1041_v9  ;;  %v1047_v13 = vadd.s32 4294967169, %v367_v10  ;;  %v1164_v18 = vshll.u32 %v33_v11, 8  ;;  %v371_v21 = vor.u32 8388608, %v370_v14 }
   0xe   :  { %vm36_vm0 = vcmp.gt.s32.totalorder %v35_v12, 0  ;;  %v373_v16 = vadd.s32 1, %v1047_v13  ;;  %v74_v34 = vand.u32 65535, %v1164_v18  ;;  %v75_v59 = vshrl.u32 %v1164_v18, 16 }
   0xf   :  { %v37_v17 = vsel %vm36_vm0, %v35_v12, 0  ;;  %v1187_v60 = vshll.u32 %v371_v21, 8 }
  0x10   :  { %v39_v19 = vand.u32 31, %v37_v17  ;;  %vm374_vm1 = vcmp.gt.s32.totalorder %v373_v16, 0  ;;  %v38_v20 = vshrl.u32 %v37_v17, 5 }
  0x11   :  { %v375_v35 = vsel %vm374_vm1, %v373_v16, 0 }
  0x12   :  { %v40_v23 = vsub.s32 32, %v39_v19  ;;  %v42_v25 = vshll.u32 %v1123_v24, %v39_v19  ;;  %v45_v27 = vshll.u32 %v1124_v26, %v39_v19  ;;  %v48_v29 = vshll.u32 %v1125_v28, %v39_v19 }
  0x13   :  { %v51_v31 = vshll.u32 %v1126_v30, %v39_v19  ;;  %v54_v33 = vshll.u32 %v1127_v32, %v39_v19  ;;  %vm57_vm2 = vcmp.lt.s32.totalorder %v38_v20, 1  ;;  %vm58_vm3 = vcmp.lt.s32.totalorder %v38_v20, 2 }
  0x14   :  { %v41_v36 = vshrl.u32 %v1123_v24, %v40_v23  ;;  %v43_v37 = vshrl.u32 %v1124_v26, %v40_v23  ;;  %v46_v38 = vshrl.u32 %v1125_v28, %v40_v23  ;;  %v49_v39 = vshrl.u32 %v1126_v30, %v40_v23 }
  0x15   :  { %v52_v40 = vshrl.u32 %v1127_v32, %v40_v23  ;;  %v55_v42 = vshrl.u32 %v1128_v41, %v40_v23  ;;  %vm60_vm4 = vcmp.lt.s32.totalorder %v38_v20, 4  ;;  %vm59_vm5 = vcmp.lt.s32.totalorder %v38_v20, 3 }
  0x16   :  { %v44_v43 = vor.u32 %v43_v37, %v42_v25  ;;  %v47_v44 = vor.u32 %v46_v38, %v45_v27  ;;  %v50_v45 = vor.u32 %v49_v39, %v48_v29  ;;  %v1181_v48 = vand.u32 31, %v375_v35 }
  0x17   :  { %v53_v46 = vor.u32 %v52_v40, %v51_v31  ;;  %v56_v47 = vor.u32 %v55_v42, %v54_v33  ;;  %v1194_v1 = vshrl.u32 %v375_v35, 5  ;;  %v1129_v42 = vmov 0  }
  0x18   :  { %v61_v49 = vsel %vm57_vm2, %v41_v36, %v44_v43  ;;  %v62_v50 = vsel %vm60_vm4, %v50_v45, 2102212464  ;;  %v65_v51 = vsel %vm57_vm2, %v44_v43, %v47_v44  ;;  %v69_v52 = vsel %vm57_vm2, %v47_v44, %v50_v45 }
  0x19   :  { %v63_v53 = vsel %vm59_vm5, %v47_v44, %v62_v50  ;;  %v66_v54 = vsel %vm60_vm4, %v53_v46, 920167782  ;;  %v70_v55 = vsel %vm60_vm4, %v56_v47, 1326507024  ;;  %v1184_v56 = vsub.s32 32, %v1181_v48 }
  0x1a   :  { %v67_v57 = vsel %vm59_vm5, %v50_v45, %v66_v54  ;;  %v71_v58 = vsel %vm59_vm5, %v53_v46, %v70_v55  ;;  %v1190_v61 = vsel %vm58_vm3, %v61_v49, %v63_v53  ;;  %v380_v10 = vshll.u32 %v1123_v24, %v1181_v48 }
  0x1b   :  { %v68_v62 = vsel %vm58_vm3, %v65_v51, %v67_v57  ;;  %v72_v63 = vsel %vm58_vm3, %v69_v52, %v71_v58  ;;  %v381_v11 = vshrl.u32 %v1124_v26, %v1184_v56  ;;  %v383_v12 = vshll.u32 %v1124_v26, %v1181_v48 }
  0x1c   :  { %v76_v4 = vand.u32 65535, %v72_v63  ;;  %v77_v5 = vshrl.u32 %v72_v63, 16  ;;  %v98_v6 = vand.u32 65535, %v68_v62  ;;  %v99_v9 = vshrl.u32 %v68_v62, 16 }
  0x1d   :  { %v384_v13 = vshrl.u32 %v1125_v28, %v1184_v56  ;;  %v386_v17 = vshll.u32 %v1125_v28, %v1181_v48  ;;  %v1206_v40 = vor.u32 %v381_v11, %v380_v10  ;;  %v389_v47 = vshll.u32 %v1126_v30, %v1181_v48 }
  0x1e   :  { %v78_v14 = vmul.u32 %v76_v4, %v74_v34  ;;  %v79_v15 = vmul.u32 %v77_v5, %v74_v34  ;;  %v80_v16 = vmul.u32 %v76_v4, %v75_v59  ;;  %v81_v19 = vmul.u32 %v77_v5, %v75_v59 }
  0x1f   :  { %v100_v20 = vmul.u32 %v98_v6, %v74_v34  ;;  %v101_v21 = vmul.u32 %v99_v9, %v74_v34  ;;  %v102_v23 = vmul.u32 %v98_v6, %v75_v59  ;;  %v103_v31 = vmul.u32 %v99_v9, %v75_v59 }
  0x20   :  { %v82_v25 = vshll.u32 %v79_v15, 16  ;;  %v83_v27 = vshrl.u32 %v79_v15, 16  ;;  %v84_v29 = vshll.u32 %v80_v16, 16  ;;  %v85_v33 = vshrl.u32 %v80_v16, 16 }
  0x21   :  { %v104_v35 = vshll.u32 %v101_v21, 16  ;;  %v105_v36 = vshrl.u32 %v101_v21, 16  ;;  %v106_v37 = vshll.u32 %v102_v23, 16  ;;  %v107_v39 = vshrl.u32 %v102_v23, 16 }
  0x22   :  { %vm86_vm6 = vc.u32 %v78_v14, %v82_v25  ;;  %v88_v38 = vadd.s32 %v82_v25, %v78_v14  ;;  %v387_v34 = vshrl.u32 %v1126_v30, %v1184_v56  ;;  %v1215_v51 = vor.u32 %v384_v13, %v383_v12 }
  0x23   :  { %v87_v43 = vsel %vm86_vm6, 1, %v1129_v42  ;;  %vm108_vm7 = vc.u32 %v100_v20, %v104_v35  ;;  %v110_v44 = vadd.s32 %v104_v35, %v100_v20  ;;  %v390_v55 = vshrl.u32 %v1127_v32, %v1184_v56 }
  0x24   :  { %v89_v45 = vadd.s32 %v87_v43, %v81_v19  ;;  %vm90_vm8 = vc.u32 %v88_v38, %v84_v29  ;;  %v109_v46 = vsel %vm108_vm7, 1, %v1129_v42  ;;  %v388_v54 = vor.u32 %v387_v34, %v386_v17 }
  0x25   :  { %v91_v49 = vsel %vm90_vm8, 1, %v1129_v42  ;;  %v111_v50 = vadd.s32 %v109_v46, %v103_v31  ;;  %vm112_vm9 = vc.u32 %v110_v44, %v106_v37  ;;  %v392_v58 = vshll.u32 %v1127_v32, %v1181_v48 }
  0x26   :  { %v93_v52 = vadd.s32 %v91_v49, %v89_v45  ;;  %v113_v53 = vsel %vm112_vm9, 1, %v1129_v42  ;;  %v393_v59 = vshrl.u32 %v1128_v41, %v1184_v56  ;;  %vm395_vm10 = vcmp.lt.s32.totalorder %v1194_v1, 1 }
  0x27   :  { %v115_v57 = vadd.s32 %v113_v53, %v111_v50  ;;  %v1225_v63 = vadd.s32 %v110_v44, %v106_v37  ;;  %v391_v4 = vor.u32 %v390_v55, %v389_v47  ;;  %vm397_vm11 = vcmp.lt.s32.totalorder %v1194_v1, 3 }
  0x28   :  { %v94_v62 = vadd.s32 %v93_v52, %v83_v27  ;;  %v394_v6 = vor.u32 %v393_v59, %v392_v58  ;;  %vm396_vm12 = vcmp.lt.s32.totalorder %v1194_v1, 2  ;;  %vm398_vm13 = vcmp.lt.s32.totalorder %v1194_v1, 4 }
  0x29   :  { %v116_v5 = vadd.s32 %v115_v57, %v105_v36  ;;  %v403_v48 = vsel %vm395_vm10, %v1206_v40, %v1215_v51  ;;  %v404_v10 = vsel %vm398_vm13, %v391_v4, 920167782  ;;  %v1053_v11 = vadd.s32 4294967169, %v1166_v22 }
  0x2a   :  { %v1230_v9 = vadd.s32 %v94_v62, %v85_v33  ;;  %v405_v13 = vsel %vm397_vm11, %v388_v54, %v404_v10  ;;  %v412_v14 = vand.u32 65535, %v1187_v60  ;;  %v413_v15 = vshrl.u32 %v1187_v60, 16 }
  0x2b   :  { %v117_v12 = vadd.s32 %v116_v5, %v107_v39  ;;  %v118_v16 = vmul.u32 %v1164_v18, %v1190_v61  ;;  %v406_v17 = vsel %vm396_vm12, %v403_v48, %v405_v13  ;;  %v407_v22 = vsel %vm395_vm10, %v1215_v51, %v388_v54 }
  0x2c   :  { %vm120_vm14 = vc.u32 %v1230_v9, %v1225_v63  ;;  %v408_v20 = vsel %vm398_vm13, %v394_v6, 1326507024  ;;  %v436_v21 = vand.u32 65535, %v406_v17  ;;  %v437_v23 = vshrl.u32 %v406_v17, 16 }
  0x2d   :  { %v121_v19 = vadd.s32 1, %v117_v12  ;;  %v409_v25 = vsel %vm397_vm11, %v391_v4, %v408_v20  ;;  %v711_v29 = vadd.s32 1, %v1053_v11  ;;  %v379_v36 = vshrl.u32 %v1123_v24, %v1184_v56 }
  0x2e   :  { %v410_v61 = vsel %vm396_vm12, %v407_v22, %v409_v25  ;;  %v439_v27 = vmul.u32 %v437_v23, %v412_v14  ;;  %v438_v37 = vmul.u32 %v436_v21, %v412_v14  ;;  %v440_v38 = vmul.u32 %v436_v21, %v413_v15 }
  0x2f   :  { %v122_v18 = vsel %vm120_vm14, %v121_v19, %v117_v12  ;;  %v414_v33 = vand.u32 65535, %v410_v61  ;;  %v415_v35 = vshrl.u32 %v410_v61, 16  ;;  %v400_v46 = vsel %vm398_vm13, %v388_v54, 2102212464 }
  0x30   :  { %v123_v31 = vadd.s32 %v122_v18, %v118_v16  ;;  %v442_v39 = vshll.u32 %v439_v27, 16  ;;  %v444_v47 = vshll.u32 %v440_v38, 16  ;;  %v701_v49 = vand.u32 2147483647, %v1159_v8 }
  0x31   :  { %v416_v44 = vmul.u32 %v414_v33, %v412_v14  ;;  %v417_v34 = vmul.u32 %v415_v35, %v412_v14  ;;  %v418_v45 = vmul.u32 %v414_v33, %v413_v15  ;;  %vm712_vm15 = vcmp.gt.s32.totalorder %v711_v29, 0 }
  0x32   :  { %v124_v43 = vadd.s32 536870912, %v123_v31  ;;  %v419_v52 = vmul.u32 %v415_v35, %v413_v15  ;;  %v399_v56 = vsel %vm395_vm10, %v379_v36, %v1206_v40  ;;  %v441_v57 = vmul.u32 %v437_v23, %v413_v15 }
  0x33   :  { %v420_v53 = vshll.u32 %v417_v34, 16  ;;  %v422_v55 = vshll.u32 %v418_v45, 16  ;;  %vm446_vm0 = vc.u32 %v438_v37, %v442_v39  ;;  %v448_v58 = vadd.s32 %v442_v39, %v438_v37 }
  0x34   :  { %v1263_v50 = vshrl.u32 %v124_v43, 30  ;;  %v401_v54 = vsel %vm397_vm11, %v1215_v51, %v400_v46  ;;  %v447_v5 = vsel %vm446_vm0, 1, %v1129_v42  ;;  %v713_v6 = vsel %vm712_vm15, %v711_v29, 0 }
  0x35   :  { %vm424_vm1 = vc.u32 %v416_v44, %v420_v53  ;;  %v426_v62 = vadd.s32 %v420_v53, %v416_v44  ;;  %vm450_vm2 = vc.u32 %v448_v58, %v444_v47  ;;  %v421_v40 = vshrl.u32 %v417_v34, 16 }
  0x36   :  { %v126_v59 = vshll.u32 %v1263_v50, 30  ;;  %v425_v4 = vsel %vm424_vm1, 1, %v1129_v42  ;;  %v443_v12 = vshrl.u32 %v439_v27, 16  ;;  %v449_v13 = vadd.s32 %v447_v5, %v441_v57 }
  0x37   :  { %v427_v10 = vadd.s32 %v425_v4, %v419_v52  ;;  %vm428_vm3 = vc.u32 %v426_v62, %v422_v55  ;;  %v451_v14 = vsel %vm450_vm2, 1, %v1129_v42  ;;  %v423_v15 = vshrl.u32 %v418_v45, 16 }
  0x38   :  { %v127_v48 = vsub.s32 %v123_v31, %v126_v59  ;;  %v429_v11 = vsel %vm428_vm3, 1, %v1129_v42  ;;  %v402_v17 = vsel %vm396_vm12, %v399_v56, %v401_v54  ;;  %v445_v22 = vshrl.u32 %v440_v38, 16 }
  0x39   :  { %v431_v16 = vadd.s32 %v429_v11, %v427_v10  ;;  %v453_v19 = vadd.s32 %v451_v14, %v449_v13  ;;  %v715_v20 = vand.u32 31, %v713_v6  ;;  %v1279_v25 = vadd.s32 %v448_v58, %v444_v47 }
  0x3a   :  { %vm128_vm4 = vcmp.lt.s32.totalorder %v127_v48, 0  ;;  %v129_v51 = vsub.s32 0, %v127_v48  ;;  %v708_v18 = vand.u32 8388607, %v701_v49  ;;  %vm27_vm5 = vcmp.lt.s32.totalorder %v1146_v0, 0 }
  0x3b   :  { %v432_v23 = vadd.s32 %v431_v16, %v421_v40  ;;  %v454_v27 = vadd.s32 %v453_v19, %v443_v12  ;;  %v716_v29 = vsub.s32 32, %v715_v20  ;;  %v718_v31 = vshll.u32 %v1123_v24, %v715_v20 }
  0x3c   :  { %v130_v21 = vsel %vm128_vm4, %v129_v51, %v127_v48  ;;  %v119_v1 = vadd.s32 %v1225_v63, %v1230_v9  ;;  %v721_v35 = vshll.u32 %v1124_v26, %v715_v20  ;;  %v456_v38 = vmul.u32 %v1187_v60, %v402_v17 }
  0x3d   :  { %v131_v61 = vclz %v130_v21  ;;  %v1287_v33 = vadd.s32 %v432_v23, %v423_v15  ;;  %v455_v37 = vadd.s32 %v454_v27, %v445_v22  ;;  %v719_v39 = vshrl.u32 %v1124_v26, %v716_v29 }
  0x3e   :  { %v149_v43 = vsub.s32 4, %v1263_v50  ;;  %v709_v44 = vor.u32 8388608, %v708_v18  ;;  %v722_v34 = vshrl.u32 %v1125_v28, %v716_v29  ;;  %v724_v45 = vshll.u32 %v1125_v28, %v715_v20 }
  0x3f   :  { %v1042_v36 = vadd.s32 4294967294, %v131_v61  ;;  %vm458_vm6 = vc.u32 %v1287_v33, %v1279_v25  ;;  %v459_v63 = vadd.s32 1, %v455_v37  ;;  %v720_v9 = vor.u32 %v719_v39, %v718_v31 }
  0x40   :  { %v714_v47 = vshrl.u32 %v713_v6, 5  ;;  %v723_v52 = vor.u32 %v722_v34, %v721_v35  ;;  %v725_v60 = vshrl.u32 %v1126_v30, %v716_v29  ;;  %v150_v57 = vsel %vm27_vm5, %v149_v43, %v1263_v50 }
  0x41   :  { %vm1043_vm7 = vcmp.lt.s32.totalorder %v1042_v36, 0  ;;  %v460_v56 = vsel %vm458_vm6, %v459_v63, %v455_v37  ;;  %v717_v58 = vshrl.u32 %v1123_v24, %v716_v29  ;;  %v727_v59 = vshll.u32 %v1126_v30, %v715_v20 }
  0x42   :  { %v134_v46 = vsel %vm1043_vm7, 0, %v1042_v36  ;;  %v461_v28 = vadd.s32 %v460_v56, %v456_v38  ;;  %v726_v4 = vor.u32 %v725_v60, %v724_v45  ;;  %v728_v5 = vshrl.u32 %v1127_v32, %v716_v29 }
  0x43   :  { %v135_v53 = vsub.s32 32, %v134_v46  ;;  %v136_v26 = vshll.u32 %v127_v48, %v134_v46  ;;  %v139_v55 = vsub.s32 4294967266, %v134_v46  ;;  %v730_v6 = vshll.u32 %v1127_v32, %v715_v20 }
  0x44   :  { %vm733_vm8 = vcmp.lt.s32.totalorder %v714_v47, 1  ;;  %v1305_v48 = vshll.u32 %v709_v44, 8  ;;  %v462_v11 = vadd.s32 536870912, %v461_v28  ;;  %vm734_vm9 = vcmp.lt.s32.totalorder %v714_v47, 2 }
  0x45   :  { %v137_v54 = vshrl.u32 %v119_v1, %v135_v53  ;;  %v140_v62 = vadd.s32 127, %v139_v55  ;;  %v729_v50 = vor.u32 %v728_v5, %v727_v59  ;;  %v731_v24 = vshrl.u32 %v1128_v41, %v716_v29 }
  0x46   :  { %vm735_vm10 = vcmp.lt.s32.totalorder %v714_v47, 3  ;;  %vm736_vm11 = vcmp.lt.s32.totalorder %v714_v47, 4  ;;  %v1308_v13 = vshrl.u32 %v462_v11, 30  ;;  %v737_v14 = vsel %vm733_vm8, %v717_v58, %v720_v9 }
  0x47   :  { %v138_v40 = vor.u32 %v137_v54, %v136_v26  ;;  %v141_v10 = vshll.u32 %v140_v62, 23  ;;  %v732_v51 = vor.u32 %v731_v24, %v730_v6  ;;  %v738_v32 = vsel %vm736_vm11, %v726_v4, 2102212464 }
  0x48   :  { %v741_v15 = vsel %vm733_vm8, %v720_v9, %v723_v52  ;;  %v742_v16 = vsel %vm736_vm11, %v729_v50, 920167782  ;;  %v464_v22 = vshll.u32 %v1308_v13, 30  ;;  %v739_v41 = vsel %vm735_vm10, %v723_v52, %v738_v32 }
  0x49   :  { %v142_v30 = vor.u32 4788187, %v141_v10  ;;  %v145_v12 = vcvt.s32.f32 %v138_v40  ;;  %v743_v19 = vsel %vm735_vm10, %v726_v4, %v742_v16  ;;  %v1318_v20 = vsel %vm734_vm9, %v737_v14, %v739_v41 }
  0x4a   :  { %v1321_v21 = vsel %vm734_vm9, %v741_v15, %v743_v19  ;;  %v745_v23 = vsel %vm733_vm8, %v723_v52, %v726_v4  ;;  %v746_v18 = vsel %vm736_vm11, %v732_v51, 1326507024  ;;  %vm1327_vm12 = vcmp.le.f32.partialorder %v25_v2, 0.7853982 }
  0x4b   :  { %v143_v17 = vand.u32 2147483647, %v142_v30  ;;  %v465_v29 = vsub.s32 %v461_v28, %v464_v22  ;;  %v747_v31 = vsel %vm735_vm10, %v729_v50, %v746_v18  ;;  %v152_v1 = vsel %vm1327_vm12, 0, %v150_v57 }
  0x4c   :  { %v748_v35 = vsel %vm734_vm9, %v745_v23, %v747_v31  ;;  %v1336_v36 = vand.u32 65535, %v1305_v48  ;;  %v1339_v2 = vshrl.u32 %v1305_v48, 16  ;;  %v169_v34 = vadd.s32 3, %v152_v1 }
  0x4d   :  { %v146_v27 = vmul.f32 %v145_v12, %v143_v17  ;;  %vm466_vm13 = vcmp.lt.s32.totalorder %v465_v29, 0  ;;  %v467_v38 = vsub.s32 0, %v465_v29  ;;  %v752_v39 = vand.u32 65535, %v748_v35 }
  0x4e   :  { %v753_v43 = vshrl.u32 %v748_v35, 16  ;;  %v457_v57 = vadd.s32 %v1279_v25, %v1287_v33  ;;  %v1354_v59 = vand.u32 3, %v169_v34  ;;  %v1356_v4 = vand.u32 3, %v152_v1 }
  0x4f   :  { %v147_v37 = vxor.u32 2147483648, %v146_v27  ;;  %v468_v63 = vsel %vm466_vm13, %v467_v38, %v465_v29  ;;  %v754_v46 = vmul.u32 %v752_v39, %v1336_v36  ;;  %v1349_v60 = vmul.u32 %v752_v39, %v1339_v2 }
  0x50   :  { %v469_v45 = vclz %v468_v63  ;;  %v755_v47 = vmul.u32 %v753_v43, %v1336_v36  ;;  %v757_v11 = vmul.u32 %v753_v43, %v1339_v2  ;;  %vm365_vm0 = vcmp.lt.s32.totalorder %v1152_v3, 0 }
  0x51   :  { %v148_v44 = vsel %vm27_vm5, %v147_v37, %v146_v27  ;;  %v760_v58 = vshll.u32 %v1349_v60, 16  ;;  %vm172_vm2 = vcmp.eq.s32.totalorder %v1354_v59, 0  ;;  %vm175_vm3 = vcmp.eq.s32.totalorder %v1354_v59, 2 }
  0x52   :  { %v151_v9 = vsel %vm1327_vm12, %v1146_v0, %v148_v44  ;;  %v1048_v53 = vadd.s32 4294967294, %v469_v45  ;;  %v758_v26 = vshll.u32 %v755_v47, 16  ;;  %v774_v14 = vand.u32 65535, %v1321_v21 }
  0x53   :  { %v153_v52 = vmul.f32 %v151_v9, %v151_v9  ;;  %vm171_vm4 = vcmp.lt.s32.totalorder %v1354_v59, 2  ;;  %vm326_vm5 = vcmp.eq.s32.totalorder %v1356_v4, 0  ;;  %v775_v15 = vshrl.u32 %v1321_v21, 16 }
  0x54   :  { %vm1049_vm14 = vcmp.lt.s32.totalorder %v1048_v53, 0  ;;  %vm762_vm15 = vc.u32 %v754_v46, %v758_v26  ;;  %v764_v54 = vadd.s32 %v758_v26, %v754_v46  ;;  %vm168_vm6 = vweird.f32 %v1146_v0 }
  0x55   :  { %v154_v55 = vmul.f32 -0.001358992, %v153_v52  ;;  %v161_v56 = vmul.f32 -0.00019511016, %v153_v52  ;;  %v472_v5 = vsel %vm1049_vm14, 0, %v1048_v53  ;;  %v763_v25 = vsel %vm762_vm15, 1, %v1129_v42 }
  0x56   :  { %v473_v6 = vsub.s32 32, %v472_v5  ;;  %v474_v40 = vshll.u32 %v465_v29, %v472_v5  ;;  %v477_v10 = vsub.s32 4294967266, %v472_v5  ;;  %vm1361_vm1 = vc.u32 %v764_v54, %v760_v58 }
  0x57   :  { %v155_v62 = vadd.f32 0.041655596, %v154_v55  ;;  %v162_v28 = vadd.f32 0.008332121, %v161_v56  ;;  %vm1374_vm7 = vcmp.le.f32.partialorder %v363_v7, 0.7853982  ;;  %v765_v41 = vadd.s32 %v763_v25, %v757_v11 }
  0x58   :  { %v475_v30 = vshrl.u32 %v457_v57, %v473_v6  ;;  %v478_v12 = vadd.s32 127, %v477_v10  ;;  %v767_v19 = vsel %vm1361_vm1, 1, %v1129_v42  ;;  %v487_v61 = vsub.s32 4, %v1308_v13 }
  0x59   :  { %v156_v50 = vmul.f32 %v155_v62, %v153_v52  ;;  %v163_v24 = vmul.f32 %v162_v28, %v153_v52  ;;  %v759_v21 = vshrl.u32 %v755_v47, 16  ;;  %v769_v31 = vadd.s32 %v767_v19, %v765_v41 }
  0x5a   :  { %v476_v17 = vor.u32 %v475_v30, %v474_v40  ;;  %v479_v22 = vshll.u32 %v478_v12, 23  ;;  %v778_v7 = vmul.u32 %v774_v14, %v1339_v2  ;;  %v776_v37 = vmul.u32 %v774_v14, %v1336_v36 }
  0x5b   :  { %v157_v51 = vadd.f32 -0.4999988, %v156_v50  ;;  %v164_v32 = vadd.f32 -0.16666654, %v163_v24  ;;  %v777_v38 = vmul.u32 %v775_v15, %v1336_v36  ;;  %vm329_vm8 = vcmp.eq.s32.totalorder %v1356_v4, 2 }
  0x5c   :  { %v480_v27 = vor.u32 4788187, %v479_v22  ;;  %v483_v29 = vcvt.s32.f32 %v476_v17  ;;  %v761_v43 = vshrl.u32 %v1349_v60, 16  ;;  %v779_v44 = vmul.u32 %v775_v15, %v1339_v2 }
  0x5d   :  { %v158_v23 = vmul.f32 %v157_v51, %v153_v52  ;;  %v165_v18 = vmul.f32 %v164_v32, %v153_v52  ;;  %v770_v45 = vadd.s32 %v769_v31, %v759_v21  ;;  %v780_v46 = vshll.u32 %v777_v38, 16 }
  0x5e   :  { %v481_v39 = vand.u32 2147483647, %v480_v27  ;;  %vm325_vm9 = vcmp.lt.s32.totalorder %v1356_v4, 2  ;;  %v488_v52 = vsel %vm365_vm0, %v487_v61, %v1308_v13  ;;  %v782_v53 = vshll.u32 %v778_v7, 16 }
  0x5f   :  { %v159_v1 = vadd.f32 1.0, %v158_v23  ;;  %v166_v35 = vadd.f32 1.0, %v165_v18  ;;  %vm784_vm10 = vc.u32 %v776_v37, %v780_v46  ;;  %v781_v2 = vshrl.u32 %v777_v38, 16 }
  0x60   :  { %v484_v47 = vmul.f32 %v483_v29, %v481_v39  ;;  %v786_v56 = vadd.s32 %v780_v46, %v776_v37  ;;  %v771_v54 = vadd.s32 %v770_v45, %v761_v43  ;;  %v490_v25 = vsel %vm1374_vm7, 0, %v488_v52 }
  0x61   :  { %v167_v34 = vmul.f32 %v166_v35, %v151_v9  ;;  %v176_v63 = vxor.u32 2147483648, %v159_v1  ;;  %v785_v9 = vsel %vm784_vm10, 1, %v1129_v42  ;;  %v783_v33 = vshrl.u32 %v778_v7, 16 }
  0x62   :  { %v485_v60 = vxor.u32 2147483648, %v484_v47  ;;  %v787_v13 = vadd.s32 %v785_v9, %v779_v44  ;;  %vm788_vm11 = vc.u32 %v786_v56, %v782_v53  ;;  %v790_v50 = vadd.s32 %v786_v56, %v782_v53 }
  0x63   :  { %v173_v36 = vxor.u32 2147483648, %v167_v34  ;;  %v177_v26 = vsel %vm175_vm3, %v176_v63, %v167_v34  ;;  %v331_v55 = vsel %vm329_vm8, %v176_v63, %v167_v34  ;;  %v789_v59 = vsel %vm788_vm11, 1, %v1129_v42 }
  0x64   :  { %v486_v5 = vsel %vm365_vm0, %v485_v60, %v484_v47  ;;  %v791_v24 = vadd.s32 %v789_v59, %v787_v13  ;;  %v1415_v32 = vadd.s32 %v790_v50, %v771_v54  ;;  %vm796_vm12 = vc.u32 %v771_v54, %v790_v50 }
  0x65   :  { %v174_v57 = vsel %vm172_vm2, %v159_v1, %v173_v36  ;;  %v328_v58 = vsel %vm326_vm5, %v159_v1, %v173_v36  ;;  %v489_v10 = vsel %vm1374_vm7, %v1152_v3, %v486_v5  ;;  %v507_v41 = vadd.s32 3, %v490_v25 }
  0x66   :  { %v178_v62 = vsel %vm171_vm4, %v174_v57, %v177_v26  ;;  %v332_v28 = vsel %vm325_vm9, %v328_v58, %v331_v55  ;;  %v491_v4 = vmul.f32 %v489_v10, %v489_v10  ;;  %v792_v51 = vadd.s32 %v791_v24, %v781_v2 }
  0x67   :  { %v179_v6 = vsel %vm168_vm6, nan, %v178_v62  ;;  %v333_v40 = vsel %vm168_vm6, nan, %v332_v28  ;;  %v794_v61 = vmul.u32 %v1305_v48, %v1318_v20  ;;  %v508_v35 = vand.u32 3, %v507_v41 }
  0x68   :  { %335 = vst [vmem:[#allocation5 + $0x8] sm:$0xff] %v179_v6  ;;  %v338_v11 = vmul.f32 2.0, %v179_v6  ;;  %v492_v0 = vmul.f32 -0.001358992, %v491_v4  ;;  %v499_v14 = vmul.f32 -0.00019511016, %v491_v4  ;;  %v793_v19 = vadd.s32 %v792_v51, %v783_v33 }
  0x69   :  { %337 = vst [vmem:[#allocation5 + $0x10] sm:$0xff] %v333_v40  ;;  %v662_v37 = vand.u32 3, %v490_v25  ;;  %vm513_vm13 = vcmp.eq.s32.totalorder %v508_v35, 2  ;;  %vm509_vm15 = vcmp.lt.s32.totalorder %v508_v35, 2  ;;  %vm510_vm0 = vcmp.eq.s32.totalorder %v508_v35, 0 }
  0x6a   :  { %v339_v30 = vmul.f32 %v338_v11, %v333_v40  ;;  %v340_v12 = vmul.f32 %v338_v11, %v179_v6  ;;  %v493_v17 = vadd.f32 0.041655596, %v492_v0  ;;  %v500_v22 = vadd.f32 0.008332121, %v499_v14 }
  0x6b   :  { %v797_v27 = vadd.s32 1, %v793_v19  ;;  %vm667_vm14 = vcmp.eq.s32.totalorder %v662_v37, 2  ;;  %vm664_vm1 = vcmp.eq.s32.totalorder %v662_v37, 0  ;;  %vm663_vm2 = vcmp.lt.s32.totalorder %v662_v37, 2 }
  0x6c   :  { %343 = vst [vmem:[#allocation5 + $0x18] sm:$0xff] %v339_v30  ;;  %v341_v42 = vsub.f32 1.0, %v340_v12  ;;  %v346_v15 = vmul.f32 2.0, %v339_v30  ;;  %v494_v18 = vmul.f32 %v493_v17, %v491_v4  ;;  %v501_v21 = vmul.f32 %v500_v22, %v491_v4 }
  0x6d   :  { %v798_v38 = vsel %vm796_vm12, %v797_v27, %v793_v19  ;;  %vm506_vm3 = vweird.f32 %v1152_v3  ;;  %vm703_vm6 = vcmp.lt.s32.totalorder %v1159_v8, 0  ;;  %vm702_vm7 = vcmp.le.f32.partialorder %v701_v49, 0.7853982 }
  0x6e   :  { %345 = vst [vmem:[#allocation5 + $0x20] sm:$0xff] %v341_v42  ;;  %v347_v23 = vmul.f32 %v346_v15, %v341_v42  ;;  %v348_v16 = vmul.f32 %v346_v15, %v339_v30  ;;  %v495_v7 = vadd.f32 -0.4999988, %v494_v18  ;;  %v502_v1 = vadd.f32 -0.16666654, %v501_v21 }
  0x6f   :  { %v799_v34 = vadd.s32 %v798_v38, %v794_v61 }
  0x70   :  { %351 = vst [vmem:[#allocation5 + $0x28] sm:$0xff] %v347_v23  ;;  %v349_v29 = vsub.f32 1.0, %v348_v16  ;;  %v354_v31 = vmul.f32 2.0, %v347_v23  ;;  %v496_v44 = vmul.f32 %v495_v7, %v491_v4  ;;  %v503_v63 = vmul.f32 %v502_v1, %v491_v4 }
  0x71   :  { %v800_v20 = vadd.s32 536870912, %v799_v34 }
  0x72   :  { %353 = vst [vmem:[#allocation5 + $0x30] sm:$0xff] %v349_v29  ;;  %v355_v39 = vmul.f32 %v354_v31, %v349_v29  ;;  %v356_v43 = vmul.f32 %v354_v31, %v347_v23  ;;  %v497_v48 = vadd.f32 1.0, %v496_v44  ;;  %v504_v46 = vadd.f32 1.0, %v503_v63 }
  0x73   :  { %v801_v52 = vshrl.u32 %v800_v20, 30 }
  0x74   :  { %359 = vst [vmem:[#allocation5 + $0x38] sm:$0xff] %v355_v39  ;;  %v357_v45 = vsub.f32 1.0, %v356_v43  ;;  %v514_v47 = vxor.u32 2147483648, %v497_v48  ;;  %v505_v53 = vmul.f32 %v504_v46, %v489_v10 }
  0x75   :  { %v802_v36 = vshll.u32 %v801_v52, 30  ;;  %v825_v61 = vsub.s32 4, %v801_v52 }
  0x76   :  { %361 = vst [vmem:[#allocation5 + $0x40] sm:$0xff] %v357_v45  ;;  %v511_v26 = vxor.u32 2147483648, %v505_v53  ;;  %v515_v55 = vsel %vm513_vm13, %v514_v47, %v505_v53  ;;  %v669_v60 = vsel %vm667_vm14, %v514_v47, %v505_v53  ;;  %vm844_vm14 = vweird.f32 %v1159_v8 }
  0x77   :  { %v803_v2 = vsub.s32 %v799_v34, %v802_v36  ;;  %v826_v27 = vsel %vm703_vm6, %v825_v61, %v801_v52 }
  0x78   :  { %v512_v9 = vsel %vm510_vm0, %v497_v48, %v511_v26  ;;  %v666_v56 = vsel %vm664_vm1, %v497_v48, %v511_v26  ;;  %v828_v7 = vsel %vm702_vm7, 0, %v826_v27 }
  0x79   :  { %v516_v57 = vsel %vm509_vm15, %v512_v9, %v515_v55  ;;  %v670_v58 = vsel %vm663_vm2, %v666_v56, %v669_v60  ;;  %vm804_vm4 = vcmp.lt.s32.totalorder %v803_v2, 0  ;;  %v805_v54 = vsub.s32 0, %v803_v2 }
  0x7a   :  { %v517_v13 = vsel %vm506_vm3, nan, %v516_v57  ;;  %v671_v62 = vsel %vm506_vm3, nan, %v670_v58  ;;  %v845_v39 = vadd.s32 3, %v828_v7  ;;  %v1000_v48 = vand.u32 3, %v828_v7 }
  0x7b   :  { %673 = vst [vmem:[#allocation5 + $0x48] sm:$0xff] %v517_v13  ;;  %v676_v28 = vmul.f32 2.0, %v517_v13  ;;  %v806_v5 = vsel %vm804_vm4, %v805_v54, %v803_v2 }
  0x7c   :  { %675 = vst [vmem:[#allocation5 + $0x50] sm:$0xff] %v671_v62  ;;  %v807_v6 = vclz %v806_v5  ;;  %v846_v45 = vand.u32 3, %v845_v39  ;;  %vm1005_vm9 = vcmp.eq.s32.totalorder %v1000_v48, 2  ;;  %vm1002_vm12 = vcmp.eq.s32.totalorder %v1000_v48, 0 }
  0x7d   :  { %v677_v40 = vmul.f32 %v676_v28, %v671_v62  ;;  %v678_v10 = vmul.f32 %v676_v28, %v517_v13  ;;  %vm1001_vm13 = vcmp.lt.s32.totalorder %v1000_v48, 2 }
  0x7e   :  { %v1054_v59 = vadd.s32 4294967294, %v807_v6  ;;  %vm851_vm8 = vcmp.eq.s32.totalorder %v846_v45, 2  ;;  %vm847_vm10 = vcmp.lt.s32.totalorder %v846_v45, 2  ;;  %vm848_vm11 = vcmp.eq.s32.totalorder %v846_v45, 0 }
  0x7f   :  { %681 = vst [vmem:[#allocation5 + $0x58] sm:$0xff] %v677_v40  ;;  %v679_v11 = vsub.f32 1.0, %v678_v10  ;;  %v684_v3 = vmul.f32 2.0, %v677_v40 }
  0x80   :  { %vm1055_vm5 = vcmp.lt.s32.totalorder %v1054_v59, 0 }
  0x81   :  { %683 = vst [vmem:[#allocation5 + $0x60] sm:$0xff] %v679_v11  ;;  %v685_v4 = vmul.f32 %v684_v3, %v679_v11  ;;  %v686_v50 = vmul.f32 %v684_v3, %v677_v40  ;;  %v810_v24 = vsel %vm1055_vm5, 0, %v1054_v59 }
  0x82   :  { %v811_v25 = vsub.s32 32, %v810_v24  ;;  %v812_v33 = vshll.u32 %v803_v2, %v810_v24  ;;  %v815_v30 = vsub.s32 4294967266, %v810_v24 }
  0x83   :  { %689 = vst [vmem:[#allocation5 + $0x68] sm:$0xff] %v685_v4  ;;  %v687_v12 = vsub.f32 1.0, %v686_v50  ;;  %v692_v0 = vmul.f32 2.0, %v685_v4 }
  0x84   :  { %v813_v14 = vshrl.u32 %v1415_v32, %v811_v25  ;;  %v816_v51 = vadd.s32 127, %v815_v30 }
  0x85   :  { %691 = vst [vmem:[#allocation5 + $0x70] sm:$0xff] %v687_v12  ;;  %v693_v42 = vmul.f32 %v692_v0, %v687_v12  ;;  %v694_v15 = vmul.f32 %v692_v0, %v685_v4 }
  0x86   :  { %v814_v17 = vor.u32 %v813_v14, %v812_v33  ;;  %v817_v22 = vshll.u32 %v816_v51, 23 }
  0x87   :  { %697 = vst [vmem:[#allocation5 + $0x78] sm:$0xff] %v693_v42  ;;  %v695_v41 = vsub.f32 1.0, %v694_v15 }
  0x88   :  { %v818_v19 = vor.u32 4788187, %v817_v22  ;;  %v821_v23 = vcvt.s32.f32 %v814_v17 }
  0x89   :  { %699 = vst [vmem:[#allocation5 + $0x80] sm:$0xff] %v695_v41 }
  0x8a   :  { %v819_v16 = vand.u32 2147483647, %v818_v19 }
  0x8c   :  { %v822_v18 = vmul.f32 %v821_v23, %v819_v16 }
  0x8e   :  { %v823_v32 = vxor.u32 2147483648, %v822_v18 }
  0x90   :  { %v824_v21 = vsel %vm703_vm6, %v823_v32, %v822_v18 }
  0x91   :  { %v827_v29 = vsel %vm702_vm7, %v1159_v8, %v824_v21 }
  0x92   :  { %v829_v31 = vmul.f32 %v827_v29, %v827_v29 }
  0x94   :  { %v830_v1 = vmul.f32 -0.001358992, %v829_v31  ;;  %v837_v35 = vmul.f32 -0.00019511016, %v829_v31 }
  0x96   :  { %v831_v37 = vadd.f32 0.041655596, %v830_v1  ;;  %v838_v38 = vadd.f32 0.008332121, %v837_v35 }
  0x98   :  { %v832_v43 = vmul.f32 %v831_v37, %v829_v31  ;;  %v839_v44 = vmul.f32 %v838_v38, %v829_v31 }
  0x9a   :  { %v833_v34 = vadd.f32 -0.4999988, %v832_v43  ;;  %v840_v63 = vadd.f32 -0.16666654, %v839_v44 }
  0x9c   :  { %v834_v20 = vmul.f32 %v833_v34, %v829_v31  ;;  %v841_v49 = vmul.f32 %v840_v63, %v829_v31 }
  0x9e   :  { %v835_v46 = vadd.f32 1.0, %v834_v20  ;;  %v842_v47 = vadd.f32 1.0, %v841_v49 }
  0xa0   :  { %v843_v52 = vmul.f32 %v842_v47, %v827_v29  ;;  %v852_v53 = vxor.u32 2147483648, %v835_v46 }
  0xa2   :  { %v849_v36 = vxor.u32 2147483648, %v843_v52  ;;  %v853_v26 = vsel %vm851_vm8, %v852_v53, %v843_v52  ;;  %v1007_v55 = vsel %vm1005_vm9, %v852_v53, %v843_v52 }
  0xa4   :  { %v850_v60 = vsel %vm848_vm11, %v835_v46, %v849_v36  ;;  %v1004_v2 = vsel %vm1002_vm12, %v835_v46, %v849_v36 }
  0xa5   :  { %v854_v9 = vsel %vm847_vm10, %v850_v60, %v853_v26  ;;  %v1008_v56 = vsel %vm1001_vm13, %v1004_v2, %v1007_v55 }
  0xa6   :  { %v855_v57 = vsel %vm844_vm14, nan, %v854_v9  ;;  %v1009_v58 = vsel %vm844_vm14, nan, %v1008_v56 }
  0xa7   :  { %1011 = vst [vmem:[#allocation5 + $0x88] sm:$0xff] %v855_v57  ;;  %v1014_v54 = vmul.f32 2.0, %v855_v57 }
  0xa8   :  { %1013 = vst [vmem:[#allocation5 + $0x90] sm:$0xff] %v1009_v58 }
  0xa9   :  { %v1015_v13 = vmul.f32 %v1014_v54, %v1009_v58  ;;  %v1016_v62 = vmul.f32 %v1014_v54, %v855_v57 }
  0xab   :  { %1019 = vst [vmem:[#allocation5 + $0x98] sm:$0xff] %v1015_v13  ;;  %v1017_v8 = vsub.f32 1.0, %v1016_v62 }
  0xad   :  { %1021 = vst [vmem:[#allocation5 + $0xa0] sm:$0xff] %v1017_v8 }
  0xae   :  { %1034 = dma.vmem_to_hbm [thread:$0]  %s1027_s11, 2688, %s1029_s14, [#allocation4], %s1131_s15, %s1131_s15, %s1132_s16  }
  0xaf   :  { %1120 = dma.done.wait [#allocation4], 2688  }
  0xb0   :  { %1121 = vsyncadd [#allocation4], 4294964608 }
  0xb1   :  { %1039 = vsyncpa [#allocation3], 1 }
  0xb2   :  { %1040 = vsyncpa [#allocation4], 1 }

</bundles_post_ra>
